<compile_context>
chip_gen: v5e
topology: v5e:2x2
jax: 0.10.0
libtpu: 0.0.40
codegen_flags: <defaults>
</compile_context>

<pallas_src>
import jax
import jax.numpy as jnp
from jax.experimental import pallas as pl
from jax.experimental.pallas import tpu as pltpu

# Sizes from the PyTorch module
CATALOG_SIZE = 50
RANGE_COLOR = 5
INPUT_STATE_SIZE = CATALOG_SIZE + 1 + RANGE_COLOR + 1   # 57
HIDDEN_1 = 64
HIDDEN_2 = 32
OUT_DIM = 1

TM_MAX = 1024            # batch-tile rows per grid step; x tile is
                         # 1024*57*2B ~ 114 KiB (double-buffered ~228 KiB),
                         # comfortably inside VMEM on v5e/v6e/v7x.
COMPUTE_DTYPE = jnp.bfloat16


def _dqn_kernel(x_ref, w1_ref, b1_ref, w2_ref, b2_ref, w3_ref, b3_ref, o_ref):
    # dense1 + ReLU  (bf16 x bf16 -> f32 accumulate on the MXU)
    h1 = jnp.dot(x_ref[...], w1_ref[...], preferred_element_type=jnp.float32)
    h1 = jnp.maximum(h1 + b1_ref[...], 0.0)
    # dense2 + ReLU
    h2 = jnp.dot(h1.astype(w2_ref.dtype), w2_ref[...],
                 preferred_element_type=jnp.float32)
    h2 = jnp.maximum(h2 + b2_ref[...], 0.0)
    # dense3 (no activation)
    o = jnp.dot(h2.astype(w3_ref.dtype), w3_ref[...],
                preferred_element_type=jnp.float32)
    o_ref[...] = o + b3_ref[...]


def init_params(key):
    """Deterministic synthetic parameters (PyTorch Linear stores W as (out, in))."""
    ks = jax.random.split(key, 6)

    def linear_init(kw, kb, fan_in, fan_out):
        bound = 1.0 / jnp.sqrt(float(fan_in))
        w = jax.random.uniform(kw, (fan_out, fan_in), jnp.float32, -bound, bound)
        b = jax.random.uniform(kb, (fan_out,), jnp.float32, -bound, bound)
        return w, b

    w1, b1 = linear_init(ks[0], ks[1], INPUT_STATE_SIZE, HIDDEN_1)
    w2, b2 = linear_init(ks[2], ks[3], HIDDEN_1, HIDDEN_2)
    w3, b3 = linear_init(ks[4], ks[5], HIDDEN_2, OUT_DIM)
    return (w1, b1, w2, b2, w3, b3)


def prepare_params(params, compute_dtype=COMPUTE_DTYPE):
    """One-time prep: transpose to (in, out), cast weights to compute dtype.
    Biases stay f32 (added after the f32 accumulation)."""
    w1, b1, w2, b2, w3, b3 = params
    return (
        jnp.asarray(w1, jnp.float32).T.astype(compute_dtype),   # (57, 64)
        jnp.asarray(b1, jnp.float32).reshape(1, HIDDEN_1),      # (1, 64)
        jnp.asarray(w2, jnp.float32).T.astype(compute_dtype),   # (64, 32)
        jnp.asarray(b2, jnp.float32).reshape(1, HIDDEN_2),      # (1, 32)
        jnp.asarray(w3, jnp.float32).T.astype(compute_dtype),   # (32, 1)
        jnp.asarray(b3, jnp.float32).reshape(1, OUT_DIM),       # (1, 1)
    )


def _dqn_small(x, prep):
    """Plain-JAX path for tiny batches (choose_action): kernel launch + pad
    overhead would dwarf the few KFLOP of useful compute."""
    w1, b1, w2, b2, w3, b3 = prep
    h1 = jnp.maximum(
        jnp.dot(x.astype(w1.dtype), w1, preferred_element_type=jnp.float32) + b1, 0.0)
    h2 = jnp.maximum(
        jnp.dot(h1.astype(w2.dtype), w2, preferred_element_type=jnp.float32) + b2, 0.0)
    return jnp.dot(h2.astype(w3.dtype), w3, preferred_element_type=jnp.float32) + b3


def dqn_forward(x, prep, *, tm_max=TM_MAX, compute_dtype=COMPUTE_DTYPE):
    """x: [B, 57] (or a single flat state [57]) -> Q-values [B, 1] (f32)."""
    w1, b1, w2, b2, w3, b3 = prep
    x = jnp.asarray(x, jnp.float32)
    if x.ndim == 1:            # a single preprocessed state (choose_action path)
        x = x[None, :]
    B, F = x.shape

    if B <= 8:
        return _dqn_small(x, prep)

    # Batch tile: multiple of 8 sublanes, capped at tm_max.
    tm = min(tm_max, ((B + 7) // 8) * 8)
    b_pad = pl.cdiv(B, tm) * tm
    grid = (b_pad // tm,)

    xc = x.astype(compute_dtype)
    if b_pad != B:
        # Padded rows are zeros -> bias/ReLU only; sliced off below.
        xc = jnp.pad(xc, ((0, b_pad - B), (0, 0)))

    def resident(shape):
        # Full-block spec mapping every grid step to the same block, so the
        # (tiny) weights/biases are fetched once and stay VMEM-resident.
        return pl.BlockSpec(shape, lambda i: (0, 0))

    out = pl.pallas_call(
        _dqn_kernel,
        out_shape=jax.ShapeDtypeStruct((b_pad, OUT_DIM), jnp.float32),
        grid_spec=pltpu.PrefetchScalarGridSpec(
            num_scalar_prefetch=0,
            grid=grid,
            in_specs=[
                pl.BlockSpec((tm, F), lambda i: (i, 0)),   # x tile (pipelined)
                resident(w1.shape), resident(b1.shape),
                resident(w2.shape), resident(b2.shape),
                resident(w3.shape), resident(b3.shape),
            ],
            out_specs=pl.BlockSpec((tm, OUT_DIM), lambda i: (i, 0)),
        ),
        compiler_params=pltpu.CompilerParams(
            dimension_semantics=("parallel",),
        ),
    )(xc, w1, b1, w2, b2, w3, b3)

    return out[:B]


def dqn_forward_ref(x, params):
    """Pure-JAX f32 reference matching torch semantics."""
    w1, b1, w2, b2, w3, b3 = params
    x = jnp.asarray(x, jnp.float32)
    if x.ndim == 1:
        x = x[None, :]
    h1 = jnp.maximum(x @ w1.T + b1, 0.0)
    h2 = jnp.maximum(h1 @ w2.T + b2, 0.0)
    return h2 @ w3.T + b3


# TODO(synk): preprocess / PrioritizedReplayMemory / epsilon-greedy action
# selection are host-side Python control flow in the original module, not
# kernel work; only the nn.Module forward is implemented as a Pallas kernel.

if __name__ == "__main__":
    key = jax.random.PRNGKey(0)
    kx, kp = jax.random.split(key)

    params = init_params(kp)
    prep = prepare_params(params)

    # 1) Replay-buffer-sized batch (module's batch_size=256) -> Pallas path.
    batch = 256
    x = jax.random.normal(kx, (batch, INPUT_STATE_SIZE), jnp.float32)
    out = jax.block_until_ready(dqn_forward(x, prep))
    ref = dqn_forward_ref(x, params)
    assert out.shape == (batch, OUT_DIM), out.shape
    # bf16 inputs/weights with f32 accumulation -> loosened tolerance.
    assert jnp.allclose(out, ref, atol=5e-2, rtol=5e-2), (
        float(jnp.max(jnp.abs(out - ref))))

    # 2) Larger ragged batch -> exercises multi-step grid + row padding.
    big = 1500
    kx2, _ = jax.random.split(kx)
    x_big = jax.random.normal(kx2, (big, INPUT_STATE_SIZE), jnp.float32)
    out_big = jax.block_until_ready(dqn_forward(x_big, prep))
    ref_big = dqn_forward_ref(x_big, params)
    assert out_big.shape == (big, OUT_DIM), out_big.shape
    assert jnp.allclose(out_big, ref_big, atol=5e-2, rtol=5e-2), (
        float(jnp.max(jnp.abs(out_big - ref_big))))

    # 3) Tiny choose_action-style batch -> plain-JAX fast path.
    x_small = x[:2]
    out_small = jax.block_until_ready(dqn_forward(x_small, prep))
    ref_small = dqn_forward_ref(x_small, params)
    assert out_small.shape == (2, OUT_DIM), out_small.shape
    assert jnp.allclose(out_small, ref_small, atol=5e-2, rtol=5e-2)

    print("KERNEL_OK")
</pallas_src>

<mosaic_0001>
module attributes {stable_mosaic.version = 11 : i64} {
  func.func @_dqn_kernel(%arg0: i32, %arg1: memref<256x57xbf16, #tpu.memory_space<vmem>>, %arg2: memref<57x64xbf16, #tpu.memory_space<vmem>>, %arg3: memref<1x64xf32, #tpu.memory_space<vmem>>, %arg4: memref<64x32xbf16, #tpu.memory_space<vmem>>, %arg5: memref<1x32xf32, #tpu.memory_space<vmem>>, %arg6: memref<32x1xbf16, #tpu.memory_space<vmem>>, %arg7: memref<1x1xf32, #tpu.memory_space<vmem>>, %arg8: memref<256x1xf32, #tpu.memory_space<vmem>>) attributes {dimension_semantics = [#tpu.dimension_semantics<parallel>], iteration_bounds = array<i64: 1>, scalar_prefetch = 0 : i64, scratch_operands = 0 : i64, tpu.core_type = #tpu.core_type<tc>, window_params = [{transform_indices = @transform_0, window_bounds = array<i64: 256, 57>}, {pipeline_mode = #tpu.pipeline_mode<synchronous>, transform_indices = @transform_1, window_bounds = array<i64: 57, 64>}, {pipeline_mode = #tpu.pipeline_mode<synchronous>, transform_indices = @transform_2, window_bounds = array<i64: 1, 64>}, {pipeline_mode = #tpu.pipeline_mode<synchronous>, transform_indices = @transform_3, window_bounds = array<i64: 64, 32>}, {pipeline_mode = #tpu.pipeline_mode<synchronous>, transform_indices = @transform_4, window_bounds = array<i64: 1, 32>}, {pipeline_mode = #tpu.pipeline_mode<synchronous>, transform_indices = @transform_5, window_bounds = array<i64: 32, 1>}, {pipeline_mode = #tpu.pipeline_mode<synchronous>, transform_indices = @transform_6, window_bounds = array<i64: 1, 1>}, {transform_indices = @transform_7, window_bounds = array<i64: 256, 1>}]} {
    %c0 = arith.constant 0 : index
    %c0_0 = arith.constant 0 : index
    %0 = vector.load %arg1[%c0, %c0_0] : memref<256x57xbf16, #tpu.memory_space<vmem>>, vector<256x57xbf16>
    %c0_1 = arith.constant 0 : index
    %c0_2 = arith.constant 0 : index
    %1 = vector.load %arg2[%c0_1, %c0_2] : memref<57x64xbf16, #tpu.memory_space<vmem>>, vector<57x64xbf16>
    %cst = arith.constant dense<0.000000e+00> : vector<256x64xf32>
    %2 = tpu.matmul %0, %1, %cst {dimension_numbers = #tpu.dot_dimension_numbers<[1], [0], [0], [1], [0, 0, 1, 1], [], []>} : vector<256x57xbf16>, vector<57x64xbf16>, vector<256x64xf32> -> vector<256x64xf32>
    %c0_3 = arith.constant 0 : index
    %c0_4 = arith.constant 0 : index
    %3 = vector.load %arg3[%c0_3, %c0_4] : memref<1x64xf32, #tpu.memory_space<vmem>>, vector<1x64xf32>
    %4 = vector.broadcast %3 : vector<1x64xf32> to vector<256x64xf32>
    %5 = arith.addf %2, %4 : vector<256x64xf32>
    %cst_5 = arith.constant 0.000000e+00 : f32
    %6 = vector.broadcast %cst_5 : f32 to vector<256x64xf32>
    %7 = arith.maximumf %5, %6 : vector<256x64xf32>
    %8 = arith.truncf %7 : vector<256x64xf32> to vector<256x64xbf16>
    %c0_6 = arith.constant 0 : index
    %c0_7 = arith.constant 0 : index
    %9 = vector.load %arg4[%c0_6, %c0_7] : memref<64x32xbf16, #tpu.memory_space<vmem>>, vector<64x32xbf16>
    %cst_8 = arith.constant dense<0.000000e+00> : vector<256x32xf32>
    %10 = tpu.matmul %8, %9, %cst_8 {dimension_numbers = #tpu.dot_dimension_numbers<[1], [0], [0], [1], [0, 0, 1, 1], [], []>} : vector<256x64xbf16>, vector<64x32xbf16>, vector<256x32xf32> -> vector<256x32xf32>
    %c0_9 = arith.constant 0 : index
    %c0_10 = arith.constant 0 : index
    %11 = vector.load %arg5[%c0_9, %c0_10] : memref<1x32xf32, #tpu.memory_space<vmem>>, vector<1x32xf32>
    %12 = vector.broadcast %11 : vector<1x32xf32> to vector<256x32xf32>
    %13 = arith.addf %10, %12 : vector<256x32xf32>
    %cst_11 = arith.constant 0.000000e+00 : f32
    %14 = vector.broadcast %cst_11 : f32 to vector<256x32xf32>
    %15 = arith.maximumf %13, %14 : vector<256x32xf32>
    %16 = arith.truncf %15 : vector<256x32xf32> to vector<256x32xbf16>
    %c0_12 = arith.constant 0 : index
    %c0_13 = arith.constant 0 : index
    %17 = vector.load %arg6[%c0_12, %c0_13] : memref<32x1xbf16, #tpu.memory_space<vmem>>, vector<32x1xbf16>
    %cst_14 = arith.constant dense<0.000000e+00> : vector<256x1xf32>
    %18 = tpu.matmul %16, %17, %cst_14 {dimension_numbers = #tpu.dot_dimension_numbers<[1], [0], [0], [1], [0, 0, 1, 1], [], []>} : vector<256x32xbf16>, vector<32x1xbf16>, vector<256x1xf32> -> vector<256x1xf32>
    %c0_15 = arith.constant 0 : index
    %c0_16 = arith.constant 0 : index
    %19 = vector.load %arg7[%c0_15, %c0_16] : memref<1x1xf32, #tpu.memory_space<vmem>>, vector<1x1xf32>
    %20 = vector.broadcast %19 : vector<1x1xf32> to vector<256x1xf32>
    %21 = arith.addf %18, %20 : vector<256x1xf32>
    %c0_17 = arith.constant 0 : index
    %c0_18 = arith.constant 0 : index
    %22 = vector.load %arg8[%c0_17, %c0_18] : memref<256x1xf32, #tpu.memory_space<vmem>>, vector<256x1xf32>
    tpu.vector_store %arg8[%c0_17, %c0_18], %21 {strides = array<i32>} : memref<256x1xf32, #tpu.memory_space<vmem>>, vector<256x1xf32>,
    return
  }
  func.func @transform_0(%arg0: i32) -> (i32, i32) {
    %c0_i32 = arith.constant 0 : i32
    %c0_i32_0 = arith.constant 0 : i32
    return %arg0, %c0_i32 : i32, i32
  }
  func.func @transform_1(%arg0: i32) -> (i32, i32) {
    %c0_i32 = arith.constant 0 : i32
    %c0_i32_0 = arith.constant 0 : i32
    %c0_i32_1 = arith.constant 0 : i32
    return %c0_i32, %c0_i32_0 : i32, i32
  }
  func.func @transform_2(%arg0: i32) -> (i32, i32) {
    %c0_i32 = arith.constant 0 : i32
    %c0_i32_0 = arith.constant 0 : i32
    %c0_i32_1 = arith.constant 0 : i32
    return %c0_i32, %c0_i32_0 : i32, i32
  }
  func.func @transform_3(%arg0: i32) -> (i32, i32) {
    %c0_i32 = arith.constant 0 : i32
    %c0_i32_0 = arith.constant 0 : i32
    %c0_i32_1 = arith.constant 0 : i32
    return %c0_i32, %c0_i32_0 : i32, i32
  }
  func.func @transform_4(%arg0: i32) -> (i32, i32) {
    %c0_i32 = arith.constant 0 : i32
    %c0_i32_0 = arith.constant 0 : i32
    %c0_i32_1 = arith.constant 0 : i32
    return %c0_i32, %c0_i32_0 : i32, i32
  }
  func.func @transform_5(%arg0: i32) -> (i32, i32) {
    %c0_i32 = arith.constant 0 : i32
    %c0_i32_0 = arith.constant 0 : i32
    %c0_i32_1 = arith.constant 0 : i32
    return %c0_i32, %c0_i32_0 : i32, i32
  }
  func.func @transform_6(%arg0: i32) -> (i32, i32) {
    %c0_i32 = arith.constant 0 : i32
    %c0_i32_0 = arith.constant 0 : i32
    %c0_i32_1 = arith.constant 0 : i32
    return %c0_i32, %c0_i32_0 : i32, i32
  }
  func.func @transform_7(%arg0: i32) -> (i32, i32) {
    %c0_i32 = arith.constant 0 : i32
    %c0_i32_0 = arith.constant 0 : i32
    return %arg0, %c0_i32 : i32, i32
  }
}

</mosaic_0001>

<bundles_post_ra>
// kernel: tpu_custom_call.1
= control target key start
LH: loop header
LB: loop body
LE: loop exit
PB: predicated region body
PF: predicated region fallthrough
CT: control target
= control target key end

     0   :  { %vm225_vm0 = vcmask 1043456   ;;  %vm226_vm1 = vcmask 1044480   ;;  %v978_v2 = vmov 65535   ;;  %vm176_vm2 = vcmask 465920   ;;  %s1390_s1 = inlined_call_operand.vmem [shape: bf16[57,64], index: 1, kind: input, shape index: {}]   ;;  %s1391_s2 = inlined_call_operand.vmem [shape: f32[1,64], index: 2, kind: input, shape index: {}]   ;;  %s1392_s0 = inlined_call_operand.vmem [shape: bf16[256,57], index: 0, kind: input, shape index: {}]   ;;  %s1393_s3 = inlined_call_operand.vmem [shape: bf16[64,32], index: 3, kind: input, shape index: {}]   ;;  %s1394_s4 = inlined_call_operand.vmem [shape: f32[1,32], index: 4, kind: input, shape index: {}]   ;;  %s1395_s5 = inlined_call_operand.vmem [shape: bf16[32,1], index: 5, kind: input, shape index: {}]   ;;  %s1396_s6 = inlined_call_operand.<no memory space> [shape: f32[1,1], index: 6, kind: input, shape index: {}]   ;;  %s1397_s7 = inlined_call_operand.vmem [shape: f32[256,1], index: 7, kind: output, shape index: {}]  }
   0x1   :  { %v864_v0 = vld [vmem:[%s1390_s1 + $0x18] sm:$0xf]  ;;  %v957_v1 = vld [vmem:[%s1390_s1 + $0x18] sm:$0x10]  ;;  %v227_v3 = vsel %vm225_vm0, 4294967295, %v978_v2  ;;  %v956_v7 = vld [vmem:[%s1390_s1 + $0x10] sm:$0xff] }
   0x2   :  { %v865_v4 = vor.u32 %v957_v1, %v864_v0  ;;  %v228_v5 = vsel %vm226_vm1, %v227_v3, 0  ;;  %v955_v8 = vld [vmem:[%s1390_s1 + $0x8] sm:$0xff]  ;;  %v954_v9 = vld [vmem:[%s1390_s1] sm:$0xff]  ;;  %v940_v12 = vld [vmem:[%s1392_s0 + $0x10] sm:$0xff]  ;;  %vm405_vm3 = vcmask 523264   ;;  %vm611_vm4 = vcmask 261120  }
   0x3   :  { %v938_v10 = vld [vmem:[%s1392_s0] sm:$0xff]  ;;  %v939_v11 = vld [vmem:[%s1392_s0 + $0x8] sm:$0xff]  ;;  %v941_v13 = vld [vmem:[%s1392_s0 + $0x18] sm:$0xff]  ;;  %vm749_vm5 = vcmask 7168  }
   0x4   :  { %v230_v6 = vand.u32 %v865_v4, %v228_v5  ;;  %v942_v14 = vld [vmem:[%s1392_s0 + $0x20] sm:$0xff]  ;;  %v943_v16 = vld [vmem:[%s1392_s0 + $0x28] sm:$0xff]  ;;  %v961_v18 = vld [vmem:[%s1393_s3 + $0x18] sm:$0xff] }
   0x5   :  { %v950_v15 = vld [vmem:[%s1392_s0 + $0x60] sm:$0xff]  ;;  %v951_v17 = vld [vmem:[%s1392_s0 + $0x68] sm:$0xff]  ;;  %v944_v19 = vld [vmem:[%s1392_s0 + $0x30] sm:$0xff]  ;;  %458 = vmatpush.bf16.msra.mxu1 %v961_v18 }
   0x6   :  { %236 = vmatpush.bf16.msra.mxu0 %v230_v6  ;;  %964 = vmatpush.bf16.msra.mxu3 %v230_v6  ;;  %v960_v20 = vld [vmem:[%s1393_s3 + $0x10] sm:$0xff]  ;;  %v959_v21 = vld [vmem:[%s1393_s3 + $0x8] sm:$0xff]  ;;  %v958_v22 = vld [vmem:[%s1393_s3] sm:$0xff] }
   0x7   :  { %v952_v23 = vld [vmem:[%s1392_s0 + $0x70] sm:$0xff]  ;;  %v945_v24 = vld [vmem:[%s1392_s0 + $0x38] sm:$0xff]  ;;  %v946_v26 = vld [vmem:[%s1392_s0 + $0x40] sm:$0xff] }
   0x8   :  { %v953_v25 = vld [vmem:[%s1392_s0 + $0x78] sm:$0xff]  ;;  %v1100_v28 = vld [vmem:[%s1391_s2] ss:$0 sm:$0xff]  ;;  %v947_v35 = vld [vmem:[%s1392_s0 + $0x48] sm:$0xff] }
   0x9   :  { %459 = vmatpush.bf16.msra.mxu1 %v960_v20  ;;  %v948_v43 = vld [vmem:[%s1392_s0 + $0x50] sm:$0xff]  ;;  %v949_v51 = vld [vmem:[%s1392_s0 + $0x58] sm:$0xff] }
   0xa   :  { %237 = vmatpush.bf16.msra.mxu0 %v956_v7  ;;  %965 = vmatpush.bf16.msra.mxu3 %v956_v7 }
   0xd   :  { %460 = vmatpush.bf16.msra.mxu1 %v959_v21 }
   0xe   :  { %238 = vmatpush.bf16.msra.mxu0 %v955_v8  ;;  %966 = vmatpush.bf16.msra.mxu3 %v955_v8 }
  0x11   :  { %461 = vmatpush.bf16.msra.mxu1 %v958_v22 }
  0x12   :  { %239 = vmatpush.bf16.msra.mxu0 %v954_v9  ;;  %967 = vmatpush.bf16.msra.mxu3 %v954_v9 }
  0x15   :  { %866 = vmatmul.msk.bf16.vlgmr.msra.gmra.mxu0 %vm176_vm2, %v938_v10  ;;  %878 = vmatmul.msk.bf16.vlgmr.msra.gmra.mxu3 %vm176_vm2, %v950_v15 }
  0x16   :  { %968 = vmatpush.bf16.msrb.mxu3 %v961_v18 }
  0x1a   :  { %969 = vmatpush.bf16.msrb.mxu3 %v960_v20 }
  0x1e   :  { %970 = vmatpush.bf16.msrb.mxu3 %v959_v21 }
  0x22   :  { %971 = vmatpush.bf16.msrb.mxu3 %v958_v22 }
  0x25   :  { %867 = vmatmul.msk.bf16.gmra.mxu0 %vm176_vm2, %v939_v11  ;;  %879 = vmatmul.msk.bf16.gmra.mxu3 %vm176_vm2, %v951_v17 }
  0x35   :  { %868 = vmatmul.msk.bf16.gmra.mxu0 %vm176_vm2, %v940_v12  ;;  %880 = vmatmul.msk.bf16.gmra.mxu3 %vm176_vm2, %v952_v23 }
  0x45   :  { %869 = vmatmul.msk.bf16.gmra.mxu0 %vm176_vm2, %v941_v13  ;;  %881 = vmatmul.msk.bf16.gmra.mxu3 %vm176_vm2, %v953_v25 }
  0x55   :  { %870 = vmatmul.msk.bf16.gmra.mxu0 %vm176_vm2, %v942_v14 }
  0x65   :  { %871 = vmatmul.msk.bf16.gmra.mxu0 %vm176_vm2, %v943_v16 }
  0x75   :  { %872 = vmatmul.msk.bf16.gmra.mxu0 %vm176_vm2, %v944_v19 }
  0x85   :  { %873 = vmatmul.msk.bf16.gmra.mxu0 %vm176_vm2, %v945_v24 }
  0x92   :  { %v241_v27 = vpop.f32.mrf.mxu0 }
  0x93   :  { %v242_v29 = vadd.f32 %v1100_v28, %v241_v27 }
  0x95   :  { %874 = vmatmul.msk.bf16.gmra.mxu0 %vm176_vm2, %v946_v26  ;;  %v321_v32 = vmax.f32 %v242_v29, 0.0 }
  0x98   :  { %v301_v3 = vpop.f32.mrf.mxu3 }
  0x99   :  { %v302_v5 = vadd.f32 %v1100_v28, %v301_v3 }
  0x9a   :  { %v243_v30 = vpop.f32.mrf.mxu0 }
  0x9b   :  { %v244_v31 = vadd.f32 %v1100_v28, %v243_v30  ;;  %v345_v11 = vmax.f32 %v302_v5, 0.0 }
  0x9d   :  { %v322_v33 = vmax.f32 %v244_v31, 0.0 }
  0x9f   :  { %v353_v34 = vpack.c.bf16 %v322_v33, %v321_v32  ;;  %v963_v33 = vld [vmem:[%s1395_s5 + $0x8] sm:$0xff] }
  0xa0   :  { %v303_v8 = vpop.f32.mrf.mxu3  ;;  %666 = vmatpush.bf16.msra.mxu2 %v963_v33  ;;  %972 = vmatpush.bf16.msra.mxu3 %v963_v33 }
  0xa1   :  { %898 = vmatmul.msk.bf16.vlgmr.msra.gmra.mxu1 %vm405_vm3, %v353_v34  ;;  %v304_v12 = vadd.f32 %v1100_v28, %v303_v8  ;;  %v962_v34 = vld [vmem:[%s1395_s5] sm:$0xff] }
  0xa2   :  { %v246_v36 = vpop.f32.mrf.mxu0 }
  0xa3   :  { %v247_v37 = vadd.f32 %v1100_v28, %v246_v36  ;;  %v346_v14 = vmax.f32 %v304_v12, 0.0 }
  0xa4   :  { %667 = vmatpush.bf16.msra.mxu2 %v962_v34  ;;  %973 = vmatpush.bf16.msra.mxu3 %v962_v34 }
  0xa5   :  { %875 = vmatmul.msk.bf16.gmra.mxu0 %vm176_vm2, %v947_v35  ;;  %v323_v40 = vmax.f32 %v247_v37, 0.0  ;;  %v365_v15 = vpack.c.bf16 %v346_v14, %v345_v11 }
  0xa7   :  { %910 = vmatmul.msk.bf16.vlgmr.msrb.gmra.mxu3 %vm405_vm3, %v365_v15 }
  0xa8   :  { %v306_v17 = vpop.f32.mrf.mxu3 }
  0xa9   :  { %v307_v19 = vadd.f32 %v1100_v28, %v306_v17 }
  0xaa   :  { %v248_v38 = vpop.f32.mrf.mxu0 }
  0xab   :  { %v249_v39 = vadd.f32 %v1100_v28, %v248_v38  ;;  %v347_v25 = vmax.f32 %v307_v19, 0.0 }
  0xad   :  { %v324_v41 = vmax.f32 %v249_v39, 0.0 }
  0xaf   :  { %v354_v42 = vpack.c.bf16 %v324_v41, %v323_v40 }
  0xb0   :  { %v308_v22 = vpop.f32.mrf.mxu3 }
  0xb1   :  { %899 = vmatmul.msk.bf16.gmra.mxu1 %vm405_vm3, %v354_v42  ;;  %v309_v26 = vadd.f32 %v1100_v28, %v308_v22 }
  0xb2   :  { %v251_v44 = vpop.f32.mrf.mxu0 }
  0xb3   :  { %v252_v45 = vadd.f32 %v1100_v28, %v251_v44  ;;  %v348_v29 = vmax.f32 %v309_v26, 0.0 }
  0xb5   :  { %876 = vmatmul.msk.bf16.gmra.mxu0 %vm176_vm2, %v948_v43  ;;  %v325_v48 = vmax.f32 %v252_v45, 0.0  ;;  %v366_v30 = vpack.c.bf16 %v348_v29, %v347_v25 }
  0xb7   :  { %911 = vmatmul.msk.bf16.gmra.mxu3 %vm405_vm3, %v366_v30 }
  0xb8   :  { %v311_v32 = vpop.f32.mrf.mxu3 }
  0xb9   :  { %v312_v36 = vadd.f32 %v1100_v28, %v311_v32 }
  0xba   :  { %v253_v46 = vpop.f32.mrf.mxu0 }
  0xbb   :  { %v254_v47 = vadd.f32 %v1100_v28, %v253_v46  ;;  %v349_v42 = vmax.f32 %v312_v36, 0.0 }
  0xbd   :  { %v326_v49 = vmax.f32 %v254_v47, 0.0 }
  0xbf   :  { %v355_v50 = vpack.c.bf16 %v326_v49, %v325_v48 }
  0xc0   :  { %v313_v39 = vpop.f32.mrf.mxu3 }
  0xc1   :  { %900 = vmatmul.msk.bf16.gmra.mxu1 %vm405_vm3, %v355_v50  ;;  %v314_v43 = vadd.f32 %v1100_v28, %v313_v39 }
  0xc2   :  { %v256_v52 = vpop.f32.mrf.mxu0 }
  0xc3   :  { %v257_v53 = vadd.f32 %v1100_v28, %v256_v52  ;;  %v350_v45 = vmax.f32 %v314_v43, 0.0 }
  0xc5   :  { %877 = vmatmul.msk.bf16.gmra.mxu0 %vm176_vm2, %v949_v51  ;;  %v327_v56 = vmax.f32 %v257_v53, 0.0  ;;  %v367_v46 = vpack.c.bf16 %v350_v45, %v349_v42 }
  0xc7   :  { %912 = vmatmul.msk.bf16.gmra.mxu3 %vm405_vm3, %v367_v46 }
  0xc8   :  { %v316_v48 = vpop.f32.mrf.mxu3 }
  0xc9   :  { %v317_v50 = vadd.f32 %v1100_v28, %v316_v48 }
  0xca   :  { %v258_v54 = vpop.f32.mrf.mxu0 }
  0xcb   :  { %v259_v55 = vadd.f32 %v1100_v28, %v258_v54 }
  0xcd   :  { %v328_v57 = vmax.f32 %v259_v55, 0.0 }
  0xcf   :  { %v356_v58 = vpack.c.bf16 %v328_v57, %v327_v56  ;;  %v351_v56 = vmax.f32 %v317_v50, 0.0 }
  0xd0   :  { %v318_v53 = vpop.f32.mrf.mxu3 }
  0xd1   :  { %901 = vmatmul.msk.bf16.gmra.mxu1 %vm405_vm3, %v356_v58  ;;  %v319_v57 = vadd.f32 %v1100_v28, %v318_v53 }
  0xd2   :  { %v261_v59 = vpop.f32.mrf.mxu0 }
  0xd3   :  { %v262_v60 = vadd.f32 %v1100_v28, %v261_v59 }
  0xd5   :  { %v329_v63 = vmax.f32 %v262_v60, 0.0  ;;  %v352_v60 = vmax.f32 %v319_v57, 0.0 }
  0xda   :  { %v263_v61 = vpop.f32.mrf.mxu0 }
  0xdb   :  { %v264_v62 = vadd.f32 %v1100_v28, %v263_v61  ;;  %v1161_v61 = vld [vmem:[%s1394_s4] ss:$0 sm:$0xff] }
  0xdd   :  { %v330_v0 = vmax.f32 %v264_v62, 0.0  ;;  %v368_v62 = vpack.c.bf16 %v352_v60, %v351_v56 }
  0xdf   :  { %v357_v1 = vpack.c.bf16 %v330_v0, %v329_v63  ;;  %913 = vmatmul.msk.bf16.gmra.mxu3 %vm405_vm3, %v368_v62 }
  0xe1   :  { %902 = vmatmul.msk.bf16.gmra.mxu1 %vm405_vm3, %v357_v1 }
  0xe2   :  { %v266_v2 = vpop.f32.mrf.mxu0 }
  0xe3   :  { %v267_v4 = vadd.f32 %v1100_v28, %v266_v2 }
  0xe5   :  { %v331_v9 = vmax.f32 %v267_v4, 0.0 }
  0xea   :  { %v268_v6 = vpop.f32.mrf.mxu0 }
  0xeb   :  { %v269_v7 = vadd.f32 %v1100_v28, %v268_v6 }
  0xed   :  { %v332_v10 = vmax.f32 %v269_v7, 0.0 }
  0xef   :  { %v358_v13 = vpack.c.bf16 %v332_v10, %v331_v9 }
  0xf1   :  { %903 = vmatmul.msk.bf16.gmra.mxu1 %vm405_vm3, %v358_v13 }
  0xf2   :  { %v271_v16 = vpop.f32.mrf.mxu0 }
  0xf3   :  { %v272_v18 = vadd.f32 %v1100_v28, %v271_v16 }
  0xf5   :  { %v333_v23 = vmax.f32 %v272_v18, 0.0 }
  0xfa   :  { %v273_v20 = vpop.f32.mrf.mxu0 }
  0xfb   :  { %v274_v21 = vadd.f32 %v1100_v28, %v273_v20 }
  0xfd   :  { %v334_v24 = vmax.f32 %v274_v21, 0.0 }
  0xff   :  { %v359_v27 = vpack.c.bf16 %v334_v24, %v333_v23 }
 0x101   :  { %904 = vmatmul.msk.bf16.gmra.mxu1 %vm405_vm3, %v359_v27 }
 0x102   :  { %v276_v31 = vpop.f32.mrf.mxu0 }
 0x103   :  { %v277_v35 = vadd.f32 %v1100_v28, %v276_v31 }
 0x105   :  { %v335_v40 = vmax.f32 %v277_v35, 0.0 }
 0x10a   :  { %v278_v37 = vpop.f32.mrf.mxu0 }
 0x10b   :  { %v279_v38 = vadd.f32 %v1100_v28, %v278_v37 }
 0x10d   :  { %v336_v41 = vmax.f32 %v279_v38, 0.0 }
 0x10f   :  { %v360_v44 = vpack.c.bf16 %v336_v41, %v335_v40 }
 0x111   :  { %905 = vmatmul.msk.bf16.gmra.mxu1 %vm405_vm3, %v360_v44 }
 0x112   :  { %v281_v47 = vpop.f32.mrf.mxu0 }
 0x113   :  { %v282_v49 = vadd.f32 %v1100_v28, %v281_v47 }
 0x115   :  { %v337_v54 = vmax.f32 %v282_v49, 0.0 }
 0x11a   :  { %v283_v51 = vpop.f32.mrf.mxu0 }
 0x11b   :  { %v284_v52 = vadd.f32 %v1100_v28, %v283_v51 }
 0x11d   :  { %v338_v55 = vmax.f32 %v284_v52, 0.0 }
 0x11e   :  { %v463_v58 = vpop.f32.mrf.mxu1 }
 0x11f   :  { %v361_v59 = vpack.c.bf16 %v338_v55, %v337_v54  ;;  %v464_v0 = vadd.f32 %v1161_v61, %v463_v58 }
 0x121   :  { %906 = vmatmul.msk.bf16.gmra.mxu1 %vm405_vm3, %v361_v59  ;;  %v543_v3 = vmax.f32 %v464_v0, 0.0 }
 0x122   :  { %v286_v63 = vpop.f32.mrf.mxu0 }
 0x123   :  { %v287_v4 = vadd.f32 %v1100_v28, %v286_v63 }
 0x125   :  { %v339_v9 = vmax.f32 %v287_v4, 0.0 }
 0x126   :  { %v465_v1 = vpop.f32.mrf.mxu1 }
 0x127   :  { %v466_v2 = vadd.f32 %v1161_v61, %v465_v1 }
 0x129   :  { %v544_v5 = vmax.f32 %v466_v2, 0.0 }
 0x12a   :  { %v288_v6 = vpop.f32.mrf.mxu0  ;;  %v523_v57 = vpop.f32.mrf.mxu3 }
 0x12b   :  { %v575_v7 = vpack.c.bf16 %v544_v5, %v543_v3  ;;  %v289_v8 = vadd.f32 %v1100_v28, %v288_v6  ;;  %v524_v63 = vadd.f32 %v1161_v61, %v523_v57 }
 0x12d   :  { %v340_v10 = vmax.f32 %v289_v8, 0.0  ;;  %922 = vmatmul.msk.bf16.vlgmr.msra.gmra.mxu2 %vm611_vm4, %v575_v7  ;;  %v567_v2 = vmax.f32 %v524_v63, 0.0 }
 0x12e   :  { %v468_v11 = vpop.f32.mrf.mxu1 }
 0x12f   :  { %v362_v12 = vpack.c.bf16 %v340_v10, %v339_v9  ;;  %v469_v14 = vadd.f32 %v1161_v61, %v468_v11  ;;  %v12_v10 = vstv %s1396_s6 }
 0x130   :  { %13 = vst [vmem:[#allocation2] sm:$0x1] %v12_v10 }
 0x131   :  { %907 = vmatmul.msk.bf16.gmra.mxu1 %vm405_vm3, %v362_v12  ;;  %v545_v17 = vmax.f32 %v469_v14, 0.0 }
 0x132   :  { %v291_v13 = vpop.f32.mrf.mxu0  ;;  %v525_v1 = vpop.f32.mrf.mxu3 }
 0x133   :  { %v292_v18 = vadd.f32 %v1100_v28, %v291_v13  ;;  %v526_v3 = vadd.f32 %v1161_v61, %v525_v1 }
 0x135   :  { %v341_v23 = vmax.f32 %v292_v18, 0.0  ;;  %v568_v4 = vmax.f32 %v526_v3, 0.0 }
 0x136   :  { %v470_v15 = vpop.f32.mrf.mxu1 }
 0x137   :  { %v471_v16 = vadd.f32 %v1161_v61, %v470_v15  ;;  %v1195_v6 = vpack.c.bf16 %v568_v4, %v567_v2 }
 0x139   :  { %v546_v19 = vmax.f32 %v471_v16, 0.0 }
 0x13a   :  { %v293_v20 = vpop.f32.mrf.mxu0  ;;  %v528_v8 = vpop.f32.mrf.mxu3 }
 0x13b   :  { %v576_v21 = vpack.c.bf16 %v546_v19, %v545_v17  ;;  %v294_v22 = vadd.f32 %v1100_v28, %v293_v20  ;;  %v529_v14 = vadd.f32 %v1161_v61, %v528_v8 }
 0x13d   :  { %v342_v24 = vmax.f32 %v294_v22, 0.0  ;;  %923 = vmatmul.msk.bf16.gmra.mxu2 %vm611_vm4, %v576_v21  ;;  %v569_v17 = vmax.f32 %v529_v14, 0.0 }
 0x13e   :  { %v473_v25 = vpop.f32.mrf.mxu1 }
 0x13f   :  { %v363_v26 = vpack.c.bf16 %v342_v24, %v341_v23  ;;  %v474_v29 = vadd.f32 %v1161_v61, %v473_v25 }
 0x141   :  { %908 = vmatmul.msk.bf16.gmra.mxu1 %vm405_vm3, %v363_v26  ;;  %v547_v32 = vmax.f32 %v474_v29, 0.0 }
 0x142   :  { %v296_v27 = vpop.f32.mrf.mxu0  ;;  %v530_v16 = vpop.f32.mrf.mxu3 }
 0x143   :  { %v297_v33 = vadd.f32 %v1100_v28, %v296_v27  ;;  %v531_v18 = vadd.f32 %v1161_v61, %v530_v16 }
 0x145   :  { %v343_v38 = vmax.f32 %v297_v33, 0.0  ;;  %v570_v19 = vmax.f32 %v531_v18, 0.0 }
 0x146   :  { %v475_v30 = vpop.f32.mrf.mxu1 }
 0x147   :  { %v476_v31 = vadd.f32 %v1161_v61, %v475_v30  ;;  %v588_v20 = vpack.c.bf16 %v570_v19, %v569_v17 }
 0x149   :  { %v548_v34 = vmax.f32 %v476_v31, 0.0  ;;  %935 = vmatmul.msk.bf16.vlgmr.msra.gmra.mxu3 %vm611_vm4, %v588_v20 }
 0x14a   :  { %v298_v35 = vpop.f32.mrf.mxu0  ;;  %v533_v23 = vpop.f32.mrf.mxu3 }
 0x14b   :  { %v577_v36 = vpack.c.bf16 %v548_v34, %v547_v32  ;;  %v299_v37 = vadd.f32 %v1100_v28, %v298_v35  ;;  %v534_v29 = vadd.f32 %v1161_v61, %v533_v23 }
 0x14d   :  { %v344_v39 = vmax.f32 %v299_v37, 0.0  ;;  %924 = vmatmul.msk.bf16.gmra.mxu2 %vm611_vm4, %v577_v36  ;;  %v571_v32 = vmax.f32 %v534_v29, 0.0 }
 0x14e   :  { %v478_v40 = vpop.f32.mrf.mxu1 }
 0x14f   :  { %v364_v41 = vpack.c.bf16 %v344_v39, %v343_v38  ;;  %v479_v42 = vadd.f32 %v1161_v61, %v478_v40 }
 0x151   :  { %909 = vmatmul.msk.bf16.gmra.mxu1 %vm405_vm3, %v364_v41  ;;  %v549_v45 = vmax.f32 %v479_v42, 0.0 }
 0x152   :  { %v535_v31 = vpop.f32.mrf.mxu3 }
 0x153   :  { %v536_v33 = vadd.f32 %v1161_v61, %v535_v31 }
 0x155   :  { %v572_v34 = vmax.f32 %v536_v33, 0.0 }
 0x156   :  { %v480_v43 = vpop.f32.mrf.mxu1 }
 0x157   :  { %v481_v44 = vadd.f32 %v1161_v61, %v480_v43  ;;  %v589_v35 = vpack.c.bf16 %v572_v34, %v571_v32 }
 0x159   :  { %v550_v46 = vmax.f32 %v481_v44, 0.0  ;;  %936 = vmatmul.msk.bf16.gmra.mxu3 %vm611_vm4, %v589_v35  ;;  %v1215_v44 = vld [vmem:[#allocation2] ss:$0 sm:$0xff] }
 0x15b   :  { %v578_v47 = vpack.c.bf16 %v550_v46, %v549_v45 }
 0x15d   :  { %925 = vmatmul.msk.bf16.gmra.mxu2 %vm611_vm4, %v578_v47 }
 0x15e   :  { %v483_v48 = vpop.f32.mrf.mxu1 }
 0x15f   :  { %v484_v28 = vadd.f32 %v1161_v61, %v483_v48 }
 0x161   :  { %v551_v51 = vmax.f32 %v484_v28, 0.0 }
 0x162   :  { %v538_v38 = vpop.f32.mrf.mxu3 }
 0x163   :  { %v539_v43 = vadd.f32 %v1161_v61, %v538_v38 }
 0x165   :  { %v573_v47 = vmax.f32 %v539_v43, 0.0 }
 0x166   :  { %v485_v49 = vpop.f32.mrf.mxu1 }
 0x167   :  { %v486_v50 = vadd.f32 %v1161_v61, %v485_v49 }
 0x169   :  { %v552_v52 = vmax.f32 %v486_v50, 0.0 }
 0x16a   :  { %v540_v46 = vpop.f32.mrf.mxu3 }
 0x16b   :  { %v579_v53 = vpack.c.bf16 %v552_v52, %v551_v51  ;;  %v541_v48 = vadd.f32 %v1161_v61, %v540_v46 }
 0x16d   :  { %926 = vmatmul.msk.bf16.gmra.mxu2 %vm611_vm4, %v579_v53  ;;  %v574_v50 = vmax.f32 %v541_v48, 0.0 }
 0x16e   :  { %v488_v54 = vpop.f32.mrf.mxu1 }
 0x16f   :  { %v489_v55 = vadd.f32 %v1161_v61, %v488_v54  ;;  %v590_v51 = vpack.c.bf16 %v574_v50, %v573_v47 }
 0x171   :  { %v553_v59 = vmax.f32 %v489_v55, 0.0  ;;  %937 = vmatmul.msk.bf16.gmra.mxu3 %vm611_vm4, %v590_v51 }
 0x176   :  { %v490_v56 = vpop.f32.mrf.mxu1 }
 0x177   :  { %v491_v58 = vadd.f32 %v1161_v61, %v490_v56 }
 0x179   :  { %v554_v60 = vmax.f32 %v491_v58, 0.0 }
 0x17b   :  { %v580_v62 = vpack.c.bf16 %v554_v60, %v553_v59 }
 0x17d   :  { %927 = vmatmul.msk.bf16.gmra.mxu2 %vm611_vm4, %v580_v62 }
 0x17e   :  { %v493_v0 = vpop.f32.mrf.mxu1 }
 0x17f   :  { %v494_v5 = vadd.f32 %v1161_v61, %v493_v0 }
 0x181   :  { %v555_v11 = vmax.f32 %v494_v5, 0.0 }
 0x186   :  { %v495_v7 = vpop.f32.mrf.mxu1 }
 0x187   :  { %v496_v9 = vadd.f32 %v1161_v61, %v495_v7 }
 0x189   :  { %v556_v12 = vmax.f32 %v496_v9, 0.0 }
 0x18b   :  { %v581_v13 = vpack.c.bf16 %v556_v12, %v555_v11 }
 0x18d   :  { %928 = vmatmul.msk.bf16.gmra.mxu2 %vm611_vm4, %v581_v13 }
 0x18e   :  { %v498_v15 = vpop.f32.mrf.mxu1 }
 0x18f   :  { %v499_v21 = vadd.f32 %v1161_v61, %v498_v15 }
 0x191   :  { %v557_v25 = vmax.f32 %v499_v21, 0.0 }
 0x196   :  { %v500_v22 = vpop.f32.mrf.mxu1 }
 0x197   :  { %v501_v24 = vadd.f32 %v1161_v61, %v500_v22 }
 0x199   :  { %v558_v26 = vmax.f32 %v501_v24, 0.0 }
 0x19b   :  { %v582_v27 = vpack.c.bf16 %v558_v26, %v557_v25 }
 0x19d   :  { %929 = vmatmul.msk.bf16.gmra.mxu2 %vm611_vm4, %v582_v27 }
 0x19e   :  { %v503_v30 = vpop.f32.mrf.mxu1 }
 0x19f   :  { %v504_v36 = vadd.f32 %v1161_v61, %v503_v30 }
 0x1a1   :  { %v559_v40 = vmax.f32 %v504_v36, 0.0 }
 0x1a6   :  { %v505_v37 = vpop.f32.mrf.mxu1 }
 0x1a7   :  { %v506_v39 = vadd.f32 %v1161_v61, %v505_v37 }
 0x1a9   :  { %v560_v41 = vmax.f32 %v506_v39, 0.0 }
 0x1ab   :  { %v583_v42 = vpack.c.bf16 %v560_v41, %v559_v40 }
 0x1ad   :  { %930 = vmatmul.msk.bf16.gmra.mxu2 %vm611_vm4, %v583_v42 }
 0x1ae   :  { %v508_v45 = vpop.f32.mrf.mxu1 }
 0x1af   :  { %v509_v52 = vadd.f32 %v1161_v61, %v508_v45 }
 0x1b0   :  { %v669_v28 = vpop.f32.mrf.mxu2 }
 0x1b1   :  { %v670_v49 = vadd.f32 %v1215_v44, %v669_v28  ;;  %v561_v56 = vmax.f32 %v509_v52, 0.0 }
 0x1b3   :  { %750 = vst.msk [vmem:[%s1397_s7] sm:$0xff] %vm749_vm5, %v670_v49 }
 0x1b6   :  { %v510_v53 = vpop.f32.mrf.mxu1 }
 0x1b7   :  { %v511_v54 = vadd.f32 %v1161_v61, %v510_v53 }
 0x1b8   :  { %v671_v55 = vpop.f32.mrf.mxu2 }
 0x1b9   :  { %v562_v57 = vmax.f32 %v511_v54, 0.0  ;;  %v672_v58 = vadd.f32 %v1215_v44, %v671_v55 }
 0x1bb   :  { %v584_v59 = vpack.c.bf16 %v562_v57, %v561_v56  ;;  %751 = vst.msk [vmem:[%s1397_s7 + $0x8] sm:$0xff] %vm749_vm5, %v672_v58 }
 0x1bd   :  { %931 = vmatmul.msk.bf16.gmra.mxu2 %vm611_vm4, %v584_v59 }
 0x1be   :  { %v513_v60 = vpop.f32.mrf.mxu1 }
 0x1bf   :  { %v514_v0 = vadd.f32 %v1161_v61, %v513_v60 }
 0x1c0   :  { %v674_v62 = vpop.f32.mrf.mxu2 }
 0x1c1   :  { %v675_v63 = vadd.f32 %v1215_v44, %v674_v62  ;;  %v563_v4 = vmax.f32 %v514_v0, 0.0 }
 0x1c3   :  { %752 = vst.msk [vmem:[%s1397_s7 + $0x10] sm:$0xff] %vm749_vm5, %v675_v63 }
 0x1c6   :  { %v515_v1 = vpop.f32.mrf.mxu1 }
 0x1c7   :  { %v516_v2 = vadd.f32 %v1161_v61, %v515_v1 }
 0x1c8   :  { %v676_v3 = vpop.f32.mrf.mxu2 }
 0x1c9   :  { %v564_v5 = vmax.f32 %v516_v2, 0.0  ;;  %v677_v7 = vadd.f32 %v1215_v44, %v676_v3 }
 0x1cb   :  { %v585_v8 = vpack.c.bf16 %v564_v5, %v563_v4  ;;  %753 = vst.msk [vmem:[%s1397_s7 + $0x18] sm:$0xff] %vm749_vm5, %v677_v7 }
 0x1cc   :  { %v734_v34 = vpop.f32.mrf.mxu3 }
 0x1cd   :  { %932 = vmatmul.msk.bf16.gmra.mxu2 %vm611_vm4, %v585_v8  ;;  %v735_v36 = vadd.f32 %v1215_v44, %v734_v34 }
 0x1ce   :  { %v518_v9 = vpop.f32.mrf.mxu1 }
 0x1cf   :  { %v519_v12 = vadd.f32 %v1161_v61, %v518_v9  ;;  %776 = vst.msk [vmem:[%s1397_s7 + $0xd0] sm:$0xff] %vm749_vm5, %v735_v36 }
 0x1d0   :  { %v679_v10 = vpop.f32.mrf.mxu2 }
 0x1d1   :  { %v680_v11 = vadd.f32 %v1215_v44, %v679_v10  ;;  %v565_v16 = vmax.f32 %v519_v12, 0.0 }
 0x1d3   :  { %754 = vst.msk [vmem:[%s1397_s7 + $0x20] sm:$0xff] %vm749_vm5, %v680_v11 }
 0x1d4   :  { %v736_v38 = vpop.f32.mrf.mxu3 }
 0x1d5   :  { %v737_v40 = vadd.f32 %v1215_v44, %v736_v38 }
 0x1d6   :  { %v520_v13 = vpop.f32.mrf.mxu1 }
 0x1d7   :  { %v521_v14 = vadd.f32 %v1161_v61, %v520_v13  ;;  %777 = vst.msk [vmem:[%s1397_s7 + $0xd8] sm:$0xff] %vm749_vm5, %v737_v40 }
 0x1d8   :  { %v681_v15 = vpop.f32.mrf.mxu2 }
 0x1d9   :  { %v566_v17 = vmax.f32 %v521_v14, 0.0  ;;  %v682_v18 = vadd.f32 %v1215_v44, %v681_v15 }
 0x1db   :  { %v586_v19 = vpack.c.bf16 %v566_v17, %v565_v16  ;;  %755 = vst.msk [vmem:[%s1397_s7 + $0x28] sm:$0xff] %vm749_vm5, %v682_v18 }
 0x1dc   :  { %v739_v42 = vpop.f32.mrf.mxu3 }
 0x1dd   :  { %933 = vmatmul.msk.bf16.gmra.mxu2 %vm611_vm4, %v586_v19  ;;  %v740_v45 = vadd.f32 %v1215_v44, %v739_v42 }
 0x1df   :  { %778 = vst.msk [vmem:[%s1397_s7 + $0xe0] sm:$0xff] %vm749_vm5, %v740_v45 }
 0x1e0   :  { %v684_v20 = vpop.f32.mrf.mxu2 }
 0x1e1   :  { %v685_v21 = vadd.f32 %v1215_v44, %v684_v20 }
 0x1e3   :  { %756 = vst.msk [vmem:[%s1397_s7 + $0x30] sm:$0xff] %vm749_vm5, %v685_v21 }
 0x1e4   :  { %v741_v47 = vpop.f32.mrf.mxu3 }
 0x1e5   :  { %v742_v28 = vadd.f32 %v1215_v44, %v741_v47 }
 0x1e7   :  { %779 = vst.msk [vmem:[%s1397_s7 + $0xe8] sm:$0xff] %vm749_vm5, %v742_v28 }
 0x1e8   :  { %v686_v61 = vpop.f32.mrf.mxu2 }
 0x1e9   :  { %v687_v22 = vadd.f32 %v1215_v44, %v686_v61 }
 0x1eb   :  { %757 = vst.msk [vmem:[%s1397_s7 + $0x38] sm:$0xff] %vm749_vm5, %v687_v22 }
 0x1ed   :  { %934 = vmatmul.msk.bf16.gmra.mxu2 %vm611_vm4, %v1195_v6 }
 0x1f0   :  { %v689_v23 = vpop.f32.mrf.mxu2 }
 0x1f1   :  { %v690_v24 = vadd.f32 %v1215_v44, %v689_v23 }
 0x1f3   :  { %758 = vst.msk [vmem:[%s1397_s7 + $0x40] sm:$0xff] %vm749_vm5, %v690_v24 }
 0x1f4   :  { %v744_v50 = vpop.f32.mrf.mxu3 }
 0x1f5   :  { %v745_v52 = vadd.f32 %v1215_v44, %v744_v50 }
 0x1f7   :  { %780 = vst.msk [vmem:[%s1397_s7 + $0xf0] sm:$0xff] %vm749_vm5, %v745_v52 }
 0x1f8   :  { %v691_v25 = vpop.f32.mrf.mxu2 }
 0x1f9   :  { %v692_v26 = vadd.f32 %v1215_v44, %v691_v25 }
 0x1fb   :  { %759 = vst.msk [vmem:[%s1397_s7 + $0x48] sm:$0xff] %vm749_vm5, %v692_v26 }
 0x1fc   :  { %v746_v54 = vpop.f32.mrf.mxu3 }
 0x1fd   :  { %v747_v56 = vadd.f32 %v1215_v44, %v746_v54 }
 0x1ff   :  { %781 = vst.msk [vmem:[%s1397_s7 + $0xf8] sm:$0xff] %vm749_vm5, %v747_v56 }
 0x200   :  { %v694_v27 = vpop.f32.mrf.mxu2 }
 0x201   :  { %v695_v29 = vadd.f32 %v1215_v44, %v694_v27 }
 0x203   :  { %760 = vst.msk [vmem:[%s1397_s7 + $0x50] sm:$0xff] %vm749_vm5, %v695_v29 }
 0x208   :  { %v696_v6 = vpop.f32.mrf.mxu2 }
 0x209   :  { %v697_v30 = vadd.f32 %v1215_v44, %v696_v6 }
 0x20b   :  { %761 = vst.msk [vmem:[%s1397_s7 + $0x58] sm:$0xff] %vm749_vm5, %v697_v30 }
 0x210   :  { %v699_v31 = vpop.f32.mrf.mxu2 }
 0x211   :  { %v700_v32 = vadd.f32 %v1215_v44, %v699_v31 }
 0x213   :  { %762 = vst.msk [vmem:[%s1397_s7 + $0x60] sm:$0xff] %vm749_vm5, %v700_v32 }
 0x218   :  { %v701_v33 = vpop.f32.mrf.mxu2 }
 0x219   :  { %v702_v35 = vadd.f32 %v1215_v44, %v701_v33 }
 0x21b   :  { %763 = vst.msk [vmem:[%s1397_s7 + $0x68] sm:$0xff] %vm749_vm5, %v702_v35 }
 0x220   :  { %v704_v37 = vpop.f32.mrf.mxu2 }
 0x221   :  { %v705_v39 = vadd.f32 %v1215_v44, %v704_v37 }
 0x223   :  { %764 = vst.msk [vmem:[%s1397_s7 + $0x70] sm:$0xff] %vm749_vm5, %v705_v39 }
 0x228   :  { %v706_v41 = vpop.f32.mrf.mxu2 }
 0x229   :  { %v707_v43 = vadd.f32 %v1215_v44, %v706_v41 }
 0x22b   :  { %765 = vst.msk [vmem:[%s1397_s7 + $0x78] sm:$0xff] %vm749_vm5, %v707_v43 }
 0x230   :  { %v709_v46 = vpop.f32.mrf.mxu2 }
 0x231   :  { %v710_v48 = vadd.f32 %v1215_v44, %v709_v46 }
 0x233   :  { %766 = vst.msk [vmem:[%s1397_s7 + $0x80] sm:$0xff] %vm749_vm5, %v710_v48 }
 0x238   :  { %v711_v49 = vpop.f32.mrf.mxu2 }
 0x239   :  { %v712_v51 = vadd.f32 %v1215_v44, %v711_v49 }
 0x23b   :  { %767 = vst.msk [vmem:[%s1397_s7 + $0x88] sm:$0xff] %vm749_vm5, %v712_v51 }
 0x240   :  { %v714_v53 = vpop.f32.mrf.mxu2 }
 0x241   :  { %v715_v55 = vadd.f32 %v1215_v44, %v714_v53 }
 0x243   :  { %768 = vst.msk [vmem:[%s1397_s7 + $0x90] sm:$0xff] %vm749_vm5, %v715_v55 }
 0x248   :  { %v716_v57 = vpop.f32.mrf.mxu2 }
 0x249   :  { %v717_v58 = vadd.f32 %v1215_v44, %v716_v57 }
 0x24b   :  { %769 = vst.msk [vmem:[%s1397_s7 + $0x98] sm:$0xff] %vm749_vm5, %v717_v58 }
 0x250   :  { %v719_v59 = vpop.f32.mrf.mxu2 }
 0x251   :  { %v720_v60 = vadd.f32 %v1215_v44, %v719_v59 }
 0x253   :  { %770 = vst.msk [vmem:[%s1397_s7 + $0xa0] sm:$0xff] %vm749_vm5, %v720_v60 }
 0x258   :  { %v721_v62 = vpop.f32.mrf.mxu2 }
 0x259   :  { %v722_v63 = vadd.f32 %v1215_v44, %v721_v62 }
 0x25b   :  { %771 = vst.msk [vmem:[%s1397_s7 + $0xa8] sm:$0xff] %vm749_vm5, %v722_v63 }
 0x260   :  { %v724_v0 = vpop.f32.mrf.mxu2 }
 0x261   :  { %v725_v1 = vadd.f32 %v1215_v44, %v724_v0 }
 0x263   :  { %772 = vst.msk [vmem:[%s1397_s7 + $0xb0] sm:$0xff] %vm749_vm5, %v725_v1 }
 0x268   :  { %v726_v2 = vpop.f32.mrf.mxu2 }
 0x269   :  { %v727_v3 = vadd.f32 %v1215_v44, %v726_v2 }
 0x26b   :  { %773 = vst.msk [vmem:[%s1397_s7 + $0xb8] sm:$0xff] %vm749_vm5, %v727_v3 }
 0x270   :  { %v729_v4 = vpop.f32.mrf.mxu2 }
 0x271   :  { %v730_v5 = vadd.f32 %v1215_v44, %v729_v4 }
 0x273   :  { %774 = vst.msk [vmem:[%s1397_s7 + $0xc0] sm:$0xff] %vm749_vm5, %v730_v5 }
 0x278   :  { %v731_v7 = vpop.f32.mrf.mxu2 }
 0x279   :  { %v732_v8 = vadd.f32 %v1215_v44, %v731_v7 }
 0x27b   :  { %775 = vst.msk [vmem:[%s1397_s7 + $0xc8] sm:$0xff] %vm749_vm5, %v732_v8 }

</bundles_post_ra>
